<compile_context>
chip_gen: v7x
topology: tpu7x:2x2x1
jax: 0.10.0
libtpu: 0.0.40
codegen_flags: <defaults>
</compile_context>

<pallas_src>
import functools
import math

import jax
import jax.numpy as jnp
from jax.experimental import pallas as pl
from jax.experimental.pallas import tpu as pltpu

_LANE = 128  # TPU lane width: the batch tile lives on the lane axis


def _round_up(x, m):
    return ((x + m - 1) // m) * m


def _apply_act(h, activation):
    if activation == "tanh":
        return jnp.tanh(h)
    if activation == "relu":
        return jnp.maximum(h, 0.0)
    if activation == "gelu":
        # exact erf form, matching PyTorch nn.GELU default
        return jax.nn.gelu(h, approximate=False)
    raise ValueError(f"unknown activation {activation!r}")


def _mlp_fused_kernel(*refs, num_layers, activation):
    """Whole-MLP forward for one batch tile (transposed layout).

    refs = (x_ref, w0_ref, b0_ref, w1_ref, b1_ref, ..., o_ref)

    x_ref : (in_dim, TB)   — batch on the 128-lane axis
    w_i   : (out_i, in_i)  — PyTorch nn.Linear layout, un-padded
    b_i   : (out_i, 1)
    o_ref : (out_dim, TB)  — lane-dense store, no padded columns

    Every hidden matmul is (out_i, in_i) @ (in_i, TB) with zero padding; the
    activation touches exactly out_i * TB elements.  Intermediates live in
    vregs / VMEM temporaries only.
    """
    x_ref = refs[0]
    o_ref = refs[-1]
    param_refs = refs[1:-1]

    h = x_ref[...].astype(jnp.float32)  # (in_dim, TB)
    for i in range(num_layers):
        w = param_refs[2 * i][...].astype(jnp.float32)      # (out_i, in_i)
        b = param_refs[2 * i + 1][...].astype(jnp.float32)  # (out_i, 1)
        k = w.shape[1]
        if i == 0 and k <= 8:
            # Tiny contraction (PINN input dim ~2): do it as K broadcast FMAs
            # on the VPU instead of an almost-empty MXU matmul.
            acc = w[:, 0:1] * h[0:1, :]
            for j in range(1, k):
                acc = acc + w[:, j : j + 1] * h[j : j + 1, :]
            h = acc + b
        else:
            h = jnp.dot(w, h, preferred_element_type=jnp.float32) + b
        if i < num_layers - 1:  # no activation after the last Linear
            h = _apply_act(h, activation)
    o_ref[...] = h.astype(o_ref.dtype)


def _vmem_estimate_bytes(in_dim, out_dim, tb, params):
    """Rough per-core VMEM footprint (double-buffered I/O + resident params)."""
    itemsize = 4
    max_w = max(int(w.shape[0]) for w, _ in params)
    n_in = 2 * in_dim * tb * itemsize
    n_out = 2 * out_dim * tb * itemsize
    n_par = sum(int(w.size) + int(b.size) for w, b in params) * itemsize
    n_act = 2 * max_w * tb * itemsize  # live activation temporaries
    return n_in + n_out + n_par + n_act


def mlp_forward(x, params, activation, batch_tile=2048):
    """Run the fused MLP kernel over a (batch, in_dim) input.

    params: list of (w, b) with w (out, in) and b (out, 1), PyTorch layout.
    Returns (batch, out_dim).
    """
    batch, in_dim = x.shape
    num_layers = len(params)
    out_dim = int(params[-1][0].shape[0])

    # Batch tile: multiple of 128 lanes; clamp so the grid has >= 2 steps when
    # the batch is large enough (lets v7x use both TensorCores).
    tb = _round_up(min(batch_tile, max(batch, 1)), _LANE)
    if _round_up(batch, _LANE) >= 2 * _LANE:
        tb = min(tb, _round_up(-(-batch // 2), _LANE))
    batch_p = _round_up(batch, tb)
    grid = (batch_p // tb,)

    # Transposed layout: batch on the lane axis.  The wrapper-side transpose of
    # a (batch, 2) input is negligible next to the saved padded work.
    xt = jnp.transpose(x)  # (in_dim, batch)
    if batch_p != batch:
        xt = jnp.pad(xt, ((0, 0), (0, batch_p - batch)))

    in_specs = [pl.BlockSpec((in_dim, tb), lambda i: (0, i))]
    flat_params = []
    for w, b in params:
        # Constant index_map -> params stay resident in VMEM across grid steps.
        in_specs.append(pl.BlockSpec(w.shape, lambda i: (0, 0)))
        in_specs.append(pl.BlockSpec(b.shape, lambda i: (0, 0)))
        flat_params.extend([w, b])

    out_specs = pl.BlockSpec((out_dim, tb), lambda i: (0, i))

    # Only widen the scoped-VMEM limit when the footprint actually needs it
    # (v5e's default is 16 MiB); tiny PINN nets never trigger this.
    est = _vmem_estimate_bytes(in_dim, out_dim, tb, params)
    ck = dict(dimension_semantics=("parallel",))
    if est > 12 * 1024 * 1024:
        ck["vmem_limit_bytes"] = min(max(2 * est, 32 * 1024 * 1024),
                                     64 * 1024 * 1024)

    kernel = functools.partial(
        _mlp_fused_kernel, num_layers=num_layers, activation=activation
    )
    y_t = pl.pallas_call(
        kernel,
        out_shape=jax.ShapeDtypeStruct((out_dim, batch_p), x.dtype),
        grid=grid,
        in_specs=in_specs,
        out_specs=out_specs,
        compiler_params=pltpu.CompilerParams(**ck),
    )(xt, *flat_params)

    # Back to (batch, out_dim); strip batch padding only (no feature padding).
    return jnp.transpose(y_t)[:batch, :]


class MLP:
    """JAX/Pallas re-implementation of vpinn.net_class.MLP forward pass."""

    def __init__(self, layer_sizes, act_type="tanh", key=None,
                 dtype=jnp.float32, batch_tile=2048):
        assert act_type in ("tanh", "relu", "gelu")
        self.layer_sizes = list(layer_sizes)
        self.act_type = act_type
        self.batch_tile = batch_tile
        self.params = []  # (w (out,in), b (out,1)) — PyTorch nn.Linear layout
        if key is None:
            key = jax.random.PRNGKey(0)

        for i in range(len(layer_sizes) - 1):
            fan_in, fan_out = layer_sizes[i], layer_sizes[i + 1]
            key, wkey = jax.random.split(key)
            # xavier_normal_: std = gain * sqrt(2 / (fan_in + fan_out)), gain=1
            std = math.sqrt(2.0 / (fan_in + fan_out))
            w = std * jax.random.normal(wkey, (fan_out, fan_in), dtype=dtype)
            b = jnp.zeros((fan_out, 1), dtype=dtype)  # zeros_(bias)
            self.params.append((w, b))

    def __call__(self, x):
        return mlp_forward(x, self.params, activation=self.act_type,
                           batch_tile=self.batch_tile)


def _reference_forward(params, x, act_type):
    """Pure-JAX reference (standard batch-major layout)."""
    n = len(params)
    h = x
    for i, (w, b) in enumerate(params):
        h = h @ w.T + b.reshape(1, -1)
        if i < n - 1:
            h = _apply_act(h, act_type)
    return h


if __name__ == "__main__":
    # Small PINN-style MLP: input dim 2, two hidden layers of 32, scalar output.
    layer_sizes = [2, 32, 32, 1]

    key = jax.random.PRNGKey(0)
    key, xkey = jax.random.split(key)
    batch = 8
    x = jax.random.normal(xkey, (batch, layer_sizes[0]), dtype=jnp.float32)

    model = MLP(layer_sizes, act_type="tanh", key=key)
    out = model(x)
    jax.block_until_ready(out)
    ref = _reference_forward(model.params, x, "tanh")
    assert out.shape == (batch, layer_sizes[-1])
    assert jnp.allclose(out, ref, atol=1e-5, rtol=1e-5)

    # Exercise the multi-step batch grid + batch padding path.
    key, xkey2 = jax.random.split(key)
    batch2 = 300
    x2 = jax.random.normal(xkey2, (batch2, layer_sizes[0]), dtype=jnp.float32)
    model_tiled = MLP(layer_sizes, act_type="tanh",
                      key=jax.random.PRNGKey(1), batch_tile=128)
    out2 = model_tiled(x2)
    jax.block_until_ready(out2)
    ref2 = _reference_forward(model_tiled.params, x2, "tanh")
    assert out2.shape == (batch2, layer_sizes[-1])
    assert jnp.allclose(out2, ref2, atol=1e-5, rtol=1e-5)

    # ReLU variant (cheap extra coverage of the activation branch).
    model_relu = MLP(layer_sizes, act_type="relu", key=jax.random.PRNGKey(2))
    out3 = model_relu(x2)
    jax.block_until_ready(out3)
    ref3 = _reference_forward(model_relu.params, x2, "relu")
    assert jnp.allclose(out3, ref3, atol=1e-5, rtol=1e-5)

    print("KERNEL_OK")
</pallas_src>

<mosaic_0001>
module attributes {stable_mosaic.version = 11 : i64} {
  func.func @_mlp_fused_kernel(%arg0: i32, %arg1: memref<2x128xf32, #tpu.memory_space<vmem>>, %arg2: memref<32x2xf32, #tpu.memory_space<vmem>>, %arg3: memref<32x1xf32, #tpu.memory_space<vmem>>, %arg4: memref<32x32xf32, #tpu.memory_space<vmem>>, %arg5: memref<32x1xf32, #tpu.memory_space<vmem>>, %arg6: memref<1x32xf32, #tpu.memory_space<vmem>>, %arg7: memref<1x1xf32, #tpu.memory_space<vmem>>, %arg8: memref<1x128xf32, #tpu.memory_space<vmem>>) attributes {dimension_semantics = [#tpu.dimension_semantics<parallel>], iteration_bounds = array<i64: 1>, scalar_prefetch = 0 : i64, scratch_operands = 0 : i64, tpu.core_type = #tpu.core_type<tc>, window_params = [{transform_indices = @transform_0, window_bounds = array<i64: 2, 128>}, {pipeline_mode = #tpu.pipeline_mode<synchronous>, transform_indices = @transform_1, window_bounds = array<i64: 32, 2>}, {pipeline_mode = #tpu.pipeline_mode<synchronous>, transform_indices = @transform_2, window_bounds = array<i64: 32, 1>}, {pipeline_mode = #tpu.pipeline_mode<synchronous>, transform_indices = @transform_3, window_bounds = array<i64: 32, 32>}, {pipeline_mode = #tpu.pipeline_mode<synchronous>, transform_indices = @transform_4, window_bounds = array<i64: 32, 1>}, {pipeline_mode = #tpu.pipeline_mode<synchronous>, transform_indices = @transform_5, window_bounds = array<i64: 1, 32>}, {pipeline_mode = #tpu.pipeline_mode<synchronous>, transform_indices = @transform_6, window_bounds = array<i64: 1, 1>}, {transform_indices = @transform_7, window_bounds = array<i64: 1, 128>}]} {
    %c0 = arith.constant 0 : index
    %c0_0 = arith.constant 0 : index
    %0 = vector.load %arg1[%c0, %c0_0] : memref<2x128xf32, #tpu.memory_space<vmem>>, vector<2x128xf32>
    %c0_1 = arith.constant 0 : index
    %c0_2 = arith.constant 0 : index
    %1 = vector.load %arg2[%c0_1, %c0_2] : memref<32x2xf32, #tpu.memory_space<vmem>>, vector<32x2xf32>
    %c0_3 = arith.constant 0 : index
    %c0_4 = arith.constant 0 : index
    %2 = vector.load %arg3[%c0_3, %c0_4] : memref<32x1xf32, #tpu.memory_space<vmem>>, vector<32x1xf32>
    %3 = vector.extract_strided_slice %1 {offsets = [0, 0], sizes = [32, 1], strides = [1, 1]} : vector<32x2xf32> to vector<32x1xf32>
    %4 = vector.extract_strided_slice %0 {offsets = [0, 0], sizes = [1, 128], strides = [1, 1]} : vector<2x128xf32> to vector<1x128xf32>
    %5 = vector.broadcast %3 : vector<32x1xf32> to vector<32x128xf32>
    %6 = vector.broadcast %4 : vector<1x128xf32> to vector<32x128xf32>
    %7 = arith.mulf %5, %6 : vector<32x128xf32>
    %8 = vector.extract_strided_slice %1 {offsets = [0, 1], sizes = [32, 1], strides = [1, 1]} : vector<32x2xf32> to vector<32x1xf32>
    %9 = vector.extract_strided_slice %0 {offsets = [1, 0], sizes = [1, 128], strides = [1, 1]} : vector<2x128xf32> to vector<1x128xf32>
    %10 = vector.broadcast %8 : vector<32x1xf32> to vector<32x128xf32>
    %11 = vector.broadcast %9 : vector<1x128xf32> to vector<32x128xf32>
    %12 = arith.mulf %10, %11 : vector<32x128xf32>
    %13 = arith.addf %7, %12 : vector<32x128xf32>
    %14 = vector.broadcast %2 : vector<32x1xf32> to vector<32x128xf32>
    %15 = arith.addf %13, %14 : vector<32x128xf32>
    %16 = math.tanh %15 : vector<32x128xf32>
    %c0_5 = arith.constant 0 : index
    %c0_6 = arith.constant 0 : index
    %17 = vector.load %arg4[%c0_5, %c0_6] : memref<32x32xf32, #tpu.memory_space<vmem>>, vector<32x32xf32>
    %c0_7 = arith.constant 0 : index
    %c0_8 = arith.constant 0 : index
    %18 = vector.load %arg5[%c0_7, %c0_8] : memref<32x1xf32, #tpu.memory_space<vmem>>, vector<32x1xf32>
    %cst = arith.constant dense<0.000000e+00> : vector<32x128xf32>
    %19 = tpu.matmul %17, %16, %cst {dimension_numbers = #tpu.dot_dimension_numbers<[1], [0], [0], [1], [0, 0, 1, 1], [], []>} : vector<32x32xf32>, vector<32x128xf32>, vector<32x128xf32> -> vector<32x128xf32>
    %20 = vector.broadcast %18 : vector<32x1xf32> to vector<32x128xf32>
    %21 = arith.addf %19, %20 : vector<32x128xf32>
    %22 = math.tanh %21 : vector<32x128xf32>
    %c0_9 = arith.constant 0 : index
    %c0_10 = arith.constant 0 : index
    %23 = vector.load %arg6[%c0_9, %c0_10] : memref<1x32xf32, #tpu.memory_space<vmem>>, vector<1x32xf32>
    %c0_11 = arith.constant 0 : index
    %c0_12 = arith.constant 0 : index
    %24 = vector.load %arg7[%c0_11, %c0_12] : memref<1x1xf32, #tpu.memory_space<vmem>>, vector<1x1xf32>
    %cst_13 = arith.constant dense<0.000000e+00> : vector<1x128xf32>
    %25 = tpu.matmul %23, %22, %cst_13 {dimension_numbers = #tpu.dot_dimension_numbers<[1], [0], [0], [1], [0, 0, 1, 1], [], []>} : vector<1x32xf32>, vector<32x128xf32>, vector<1x128xf32> -> vector<1x128xf32>
    %26 = vector.broadcast %24 : vector<1x1xf32> to vector<1x128xf32>
    %27 = arith.addf %25, %26 : vector<1x128xf32>
    %c0_14 = arith.constant 0 : index
    %c0_15 = arith.constant 0 : index
    %28 = vector.load %arg8[%c0_14, %c0_15] : memref<1x128xf32, #tpu.memory_space<vmem>>, vector<1x128xf32>
    tpu.vector_store %arg8[%c0_14, %c0_15], %27 {strides = array<i32>} : memref<1x128xf32, #tpu.memory_space<vmem>>, vector<1x128xf32>,
    return
  }
  func.func @transform_0(%arg0: i32) -> (i32, i32) {
    %c0_i32 = arith.constant 0 : i32
    %c0_i32_0 = arith.constant 0 : i32
    return %c0_i32, %arg0 : i32, i32
  }
  func.func @transform_1(%arg0: i32) -> (i32, i32) {
    %c0_i32 = arith.constant 0 : i32
    %c0_i32_0 = arith.constant 0 : i32
    %c0_i32_1 = arith.constant 0 : i32
    return %c0_i32, %c0_i32_0 : i32, i32
  }
  func.func @transform_2(%arg0: i32) -> (i32, i32) {
    %c0_i32 = arith.constant 0 : i32
    %c0_i32_0 = arith.constant 0 : i32
    %c0_i32_1 = arith.constant 0 : i32
    return %c0_i32, %c0_i32_0 : i32, i32
  }
  func.func @transform_3(%arg0: i32) -> (i32, i32) {
    %c0_i32 = arith.constant 0 : i32
    %c0_i32_0 = arith.constant 0 : i32
    %c0_i32_1 = arith.constant 0 : i32
    return %c0_i32, %c0_i32_0 : i32, i32
  }
  func.func @transform_4(%arg0: i32) -> (i32, i32) {
    %c0_i32 = arith.constant 0 : i32
    %c0_i32_0 = arith.constant 0 : i32
    %c0_i32_1 = arith.constant 0 : i32
    return %c0_i32, %c0_i32_0 : i32, i32
  }
  func.func @transform_5(%arg0: i32) -> (i32, i32) {
    %c0_i32 = arith.constant 0 : i32
    %c0_i32_0 = arith.constant 0 : i32
    %c0_i32_1 = arith.constant 0 : i32
    return %c0_i32, %c0_i32_0 : i32, i32
  }
  func.func @transform_6(%arg0: i32) -> (i32, i32) {
    %c0_i32 = arith.constant 0 : i32
    %c0_i32_0 = arith.constant 0 : i32
    %c0_i32_1 = arith.constant 0 : i32
    return %c0_i32, %c0_i32_0 : i32, i32
  }
  func.func @transform_7(%arg0: i32) -> (i32, i32) {
    %c0_i32 = arith.constant 0 : i32
    %c0_i32_0 = arith.constant 0 : i32
    return %c0_i32, %arg0 : i32, i32
  }
}

</mosaic_0001>

<bundles_post_ra>
// kernel: tpu_custom_call.1
= control target key start
LH: loop header
LB: loop body
LE: loop exit
PB: predicated region body
PF: predicated region fallthrough
CT: control target
= control target key end

     0   :  { %s588_s0 = inlined_call_operand.vmem [shape: f32[2,128], index: 0, kind: input, shape index: {}]   ;;  %s589_s1 = inlined_call_operand.vmem [shape: f32[32,2], index: 1, kind: input, shape index: {}]   ;;  %s590_s2 = inlined_call_operand.vmem [shape: f32[32,1], index: 2, kind: input, shape index: {}]   ;;  %s591_s3 = inlined_call_operand.vmem [shape: f32[32,32], index: 3, kind: input, shape index: {}]   ;;  %s592_s4 = inlined_call_operand.vmem [shape: f32[32,1], index: 4, kind: input, shape index: {}]   ;;  %s593_s5 = inlined_call_operand.vmem [shape: f32[1,32], index: 5, kind: input, shape index: {}]   ;;  %s594_s6 = inlined_call_operand.<no memory space> [shape: f32[1,1], index: 6, kind: input, shape index: {}]   ;;  %s595_s7 = inlined_call_operand.hbm [shape: f32[1,128], index: 7, kind: output, shape index: {}]  }
   0x1   :  { %v12_v0 = vstv %s594_s6 }
   0x2   :  { %13 = vst [vmem:[#allocation2] sm:$0x1] %v12_v0 }
   0x3   :  { %v32_v1 = vld [vmem:[%s589_s1 + $0x10] sm:$0xff]  ;;  %v30_v2 = vld [vmem:[%s589_s1] sm:$0xff]  ;;  %v460_v3 = vmov 1   ;;  %v31_v4 = vld [vmem:[%s589_s1 + $0x8] sm:$0xff] }
   0x4   :  { %416 = vset.pattern.permute.xlu0 %v460_v3  ;;  %414 = vset.pattern.permute.xlu1 %v460_v3 }
   0x5   :  { %75 = vperm.xlu0 %416, %v32_v1   ;;  %67 = vperm.xlu1 %414, %v30_v2  }
   0x6   :  { %14 = vsyncpa [#allocation4], 0  ;;  %v461_v5 = vmov 0   ;;  %v33_v6 = vld [vmem:[%s589_s1 + $0x18] sm:$0xff]  ;;  %v35_v7 = vld [vmem:[%s590_s2 + $0x8] sm:$0xff]  ;;  %vm150_vm0 = vcmask 261120   ;;  %v58_v17 = vlaneseq }
   0x7   :  { %v34_v8 = vld [vmem:[%s590_s2] sm:$0xff]  ;;  %v36_v10 = vld [vmem:[%s590_s2 + $0x10] sm:$0xff]  ;;  %v37_v12 = vld [vmem:[%s590_s2 + $0x18] sm:$0xff]  ;;  %v462_v61 = vmov 0.0|0.0   ;;  %vm463_vm1 = vmmov 0   ;;  %v464_v62 = vmov 0.0  }
   0x8   :  { %v126_v9 = vld [vmem:[%s592_s4] sm:$0xff]  ;;  %v128_v11 = vld [vmem:[%s592_s4 + $0x10] sm:$0xff]  ;;  %v127_v14 = vld [vmem:[%s592_s4 + $0x8] sm:$0xff]  ;;  %v549_v20 = vshrl.u32 %v58_v17, 7  ;;  %402 = vmatprep.subr.bf16.mxu1 %v462_v61  ;;  %391 = vmatprep.mubr.msk.f32.mxu1 %vm463_vm1, %v464_v62  ;;  %s465_s9 = smov [#allocation3]  }
   0x9   :  { %417 = vset.pattern.permute.xlu0 %v461_v5  ;;  %71 = vperm.xlu1 %414, %v31_v4   ;;  %v253_v13 = vld [vmem:[#allocation2] sm:$0x1]  ;;  %v129_v15 = vld [vmem:[%s592_s4 + $0x18] sm:$0xff]  ;;  %v123_v58 = vld [vmem:[%s591_s3 + $0x8] sm:$0xff]  ;;  %s343_s10 = sshll.u32 %s465_s9, 4  ;;  %s344_s10 = int_to_ptr.vmem [resolvable:$true] %s343_s10 }
   0xa   :  { %40 = vperm.xlu0 %417, %v30_v2   ;;  %v122_v16 = vld [vmem:[%s591_s3] sm:$0xff]  ;;  %v60_v23 = vsub.s32 0, %v549_v20  ;;  %v84_v24 = vsub.s32 1, %v549_v20  ;;  %v124_v59 = vld [vmem:[%s591_s3 + $0x10] sm:$0xff]  ;;  %v125_v60 = vld [vmem:[%s591_s3 + $0x18] sm:$0xff]  ;;  %s436_s11 = scalar_lea.vmem %s344_s10, 16  ;;  %p441_p1 = scmp.lt.s32.totalorder %s344_s10, %s344_s10 }
   0xb   :  { %377 = vmatprep.mubr.msk.f32.mxu0 %vm150_vm0, %v122_v16  ;;  %v29_v25 = vld [vmem:[%s588_s0] sm:$0x3]  ;;  %p437_p0 = scmp.ne.s32.totalorder %s344_s10, %s436_s11  ;;  %s440_s12 = scalar_lea.vmem %s344_s10, 32 }
   0xc   :  { %v61_v28 = vrot.slane %v29_v25, %v60_v23  ;;  %v85_v29 = vrot.slane %v29_v25, %v84_v24  ;;  %v252_v17 = vld [vmem:[%s593_s5] sm:$0x1]  ;;  %p442_p2 = scmp.lt.s32.totalorder %s440_s12, %s436_s11 }
   0xd   :  { %415 = vset.pattern.permute.xlu1 %v461_v5 }
   0xe   :  { %45 = vperm.xlu0 %417, %v31_v4   ;;  %55 = vperm.xlu1 %415, %v33_v6   ;;  %p443_p3 = por %p442_p2, %p441_p1 }
  0x10   :  { %p444_p4 = pnand %p443_p3, %p437_p0 }
  0x12   :  { %50 = vperm.xlu0 %417, %v32_v1   ;;  %418 = vset.pattern.permute.xlu1 %v460_v3 }
  0x13   :  { %79 = vperm.xlu1 %418, %v33_v6  }
  0x16   :  { %101 = vperm.xlu0 %417, %v35_v7  }
  0x17   :  { %419 = vset.pattern.permute.xlu1 %v461_v5 }
  0x18   :  { %96 = vperm.xlu1 %419, %v34_v8  }
  0x1a   :  { %132 = vperm.xlu0 %417, %v126_v9  }
  0x1c   :  { %106 = vperm.xlu1 %419, %v36_v10  }
  0x1e   :  { %142 = vperm.xlu0 %417, %v128_v11  }
  0x20   :  { %111 = vperm.xlu1 %419, %v37_v12  }
  0x22   :  { %256 = vperm.xlu0 %417, %v253_v13  }
  0x24   :  { %137 = vperm.xlu1 %419, %v127_v14  }
  0x28   :  { %147 = vperm.xlu1 %419, %v129_v15  }
  0x84   :  { %v68_v18 = vpop.permute.xlu1 %67  ;;  %v76_v19 = vpop.permute.xlu0 %75 }
  0x85   :  { %v86_v35 = vmul.f32 %v85_v29, %v68_v18  ;;  %v88_v43 = vmul.f32 %v85_v29, %v76_v19 }
  0x88   :  { %v72_v21 = vpop.permute.xlu1 %71 }
  0x89   :  { %v41_v22 = vpop.permute.xlu0 %40  ;;  %v87_v32 = vmul.f32 %v85_v29, %v72_v21 }
  0x8a   :  { %v62_v33 = vmul.f32 %v61_v28, %v41_v22 }
  0x8c   :  { %v90_v39 = vadd.f32 %v86_v35, %v62_v33 }
  0x8d   :  { %v46_v26 = vpop.permute.xlu0 %45  ;;  %v56_v27 = vpop.permute.xlu1 %55 }
  0x8e   :  { %v63_v30 = vmul.f32 %v61_v28, %v46_v26  ;;  %v65_v47 = vmul.f32 %v61_v28, %v56_v27 }
  0x90   :  { %v91_v36 = vadd.f32 %v87_v32, %v63_v30 }
  0x91   :  { %v51_v31 = vpop.permute.xlu0 %50 }
  0x92   :  { %v80_v34 = vpop.permute.xlu1 %79  ;;  %v64_v40 = vmul.f32 %v61_v28, %v51_v31 }
  0x93   :  { %v89_v44 = vmul.f32 %v85_v29, %v80_v34 }
  0x94   :  { %v92_v46 = vadd.f32 %v88_v43, %v64_v40 }
  0x95   :  { %v102_v37 = vpop.permute.xlu0 %101  ;;  %v93_v49 = vadd.f32 %v89_v44, %v65_v47 }
  0x96   :  { %v115_v38 = vadd.f32 %v102_v37, %v91_v36 }
  0x97   :  { %v97_v41 = vpop.permute.xlu1 %96 }
  0x98   :  { %v114_v42 = vadd.f32 %v97_v41, %v90_v39  ;;  %420 = vtanh.f32 %v115_v38 }
  0x99   :  { %v133_v0 = vpop.permute.xlu0 %132 }
  0x9a   :  { %422 = vtanh.f32 %v114_v42 }
  0x9b   :  { %v107_v45 = vpop.permute.xlu1 %106 }
  0x9c   :  { %v116_v48 = vadd.f32 %v107_v45, %v92_v46 }
  0x9d   :  { %v143_v7 = vpop.permute.xlu0 %142 }
  0x9e   :  { %424 = vtanh.f32 %v116_v48 }
  0x9f   :  { %v112_v50 = vpop.permute.xlu1 %111 }
  0xa0   :  { %v117_v51 = vadd.f32 %v112_v50, %v93_v49 }
  0xa1   :  { %v257_v18 = vpop.permute.xlu0 %256 }
  0xa2   :  { %426 = vtanh.f32 %v117_v51  ;;  %v421_v52 = vpop.eup %420  ;;  %v262_v19 = vrot.slane %v257_v18, %v60_v23 }
  0xa3   :  { %v138_v63 = vpop.permute.xlu1 %137 }
  0xa4   :  { %v423_v53 = vpop.eup %422 }
  0xa5   :  { %v394_v54 = vpack.c.bf16 %v421_v52, %v423_v53 }
  0xa7   :  { %395 = vmatprep.subr.bf16.mxu0 %v394_v54  ;;  %v148_v5 = vpop.permute.xlu1 %147 }
  0xa8   :  { %397 = vmatpush3.bf16.msra.mxu0 %v394_v54  ;;  %v425_v55 = vpop.eup %424 }
  0xac   :  { %v427_v56 = vpop.eup %426 }
  0xad   :  { %v398_v57 = vpack.c.bf16 %v427_v56, %v425_v55 }
  0xaf   :  { %399 = vmatprep.subr.bf16.mxu0 %v398_v57 }
  0xb0   :  { %401 = vmatpush3.bf16.msra.mxu0 %v398_v57 }
  0xb3   :  { %378 = vmatmul.mubr.msk.f32.vlgmr.msra.gmra.mrb[0].mxu0 %vm150_vm0, %v123_v58 }
  0xb4   :  { %380 = vmatprep.mubr.msk.f32.mxu0 %vm150_vm0, %v124_v59 }
  0xb7   :  { %381 = vmatmul.mubr.msk.f32.gmra.mrb[2].mxu0 %vm150_vm0, %v125_v60 }
 0x186   :  { %v379_v1 = vpop.f32.mrb[0].mxu0 }
 0x187   :  { %v235_v2 = vadd.f32 %v379_v1, %v138_v63  ;;  %v229_v3 = vpop.f32.mrb[1].mxu0 }
 0x188   :  { %v230_v4 = vadd.f32 %v229_v3, %v133_v0 }
 0x189   :  { %428 = vtanh.f32 %v235_v2 }
 0x18a   :  { %430 = vtanh.f32 %v230_v4  ;;  %v382_v6 = vpop.f32.mrb[2].mxu0 }
 0x18b   :  { %v245_v8 = vadd.f32 %v382_v6, %v148_v5  ;;  %v239_v9 = vpop.f32.mrb[3].mxu0 }
 0x18c   :  { %v240_v10 = vadd.f32 %v239_v9, %v143_v7 }
 0x18d   :  { %432 = vtanh.f32 %v245_v8 }
 0x18e   :  { %434 = vtanh.f32 %v240_v10 }
 0x193   :  { %v429_v11 = vpop.eup %428 }
 0x194   :  { %v431_v12 = vpop.eup %430 }
 0x195   :  { %v403_v13 = vpack.c.bf16 %v429_v11, %v431_v12 }
 0x197   :  { %v433_v14 = vpop.eup %432  ;;  %404 = vmatpush3.bf16.msra.mxu1 %v403_v13 }
 0x198   :  { %v435_v15 = vpop.eup %434  ;;  %405 = vmatprep.subr.bf16.mxu1 %v462_v61 }
 0x199   :  { %v406_v16 = vpack.c.bf16 %v433_v14, %v435_v15 }
 0x19b   :  { %407 = vmatpush3.bf16.msra.mxu1 %v406_v16 }
 0x19e   :  { %392 = vmatmul.mubr.msk.f32.vlgmr.msra.gmra.mrb[0].mxu1 %vm150_vm0, %v252_v17 }
 0x271   :  { %v332_v21 = vpop.f32.mrb[0].mxu1 }
 0x272   :  { %v333_v22 = vadd.f32 %v332_v21, %v262_v19  ;;  %v393_v24 = vpop.f32.mrb[1].mxu1 }
 0x274   :  { %336 = vst [vmem:[#allocation3] sm:$0x1] %v333_v22 }
 0x275   :  { %447 = shalt.err (!%p444_p4)
}
 0x276   :  { %s448_s14 = scalar_lea.hbm %s595_s7, 16 }
 0x277   :  { %p449_p5 = scmp.ne.s32.totalorder %s595_s7, %s448_s14  ;;  %p452_p6 = scmp.lt.u32.totalorder %s448_s14, %s595_s7 }
 0x279   :  { %p454_p7 = pnand %p452_p6, %p449_p5 }
 0x27b   :  { %457 = shalt.err (!%p454_p7)
}
 0x27c   :  { %346 = dma.vmem_to_hbm [thread:$0]  %s344_s10, 16, %s595_s7, [#allocation4]  }
 0x27d   :  { %458 = dma.done.wait [#allocation4], 16  }
 0x27e   :  { %459 = vsyncadd [#allocation4], 4294967280 }
 0x27f   :  { %350 = vsyncpa [#allocation4], 1 }

</bundles_post_ra>
